<compile_context>
chip_gen: v6e
topology: v6e:2x2x1
jax: 0.10.0
libtpu: 0.0.40
codegen_flags: <defaults>
</compile_context>

<pallas_src>
import functools

import jax
import jax.numpy as jnp
from jax import lax
from jax.experimental import pallas as pl
from jax.experimental.pallas import tpu as pltpu

ALPHA = 0.85
BETA = 0.4
EPS = 1e-12  # matches torch.nn.functional.normalize default eps

# VMEM sizing: keep 2 inputs x 2 pipeline buffers of (tile_rows, D) under this
# budget; raise the scoped-VMEM limit accordingly (still < 64 MiB physical on
# v7x, and well under 128 MiB on v5e/v6e).
_INPUT_VMEM_BUDGET = 24 * 1024 * 1024
_VMEM_LIMIT_BYTES = 40 * 1024 * 1024
_MAX_TILE_ROWS = 2048


def _make_cos_stats_kernel(alpha, beta, tile_rows, total_rows):
    def kernel(s_ref, t_ref, sum_ref, cnt_ref, sum_acc, cnt_acc):
        i = pl.program_id(0)

        @pl.when(i == 0)
        def _():
            sum_acc[...] = jnp.zeros_like(sum_acc)
            cnt_acc[...] = jnp.zeros_like(cnt_acc)

        s = s_ref[...].astype(jnp.float32)            # (tile_rows, D)
        t = t_ref[...].astype(jnp.float32)            # (tile_rows, D)

        # cos via three row-sums (no full-width normalizing divides).
        ss = jnp.sum(s * s, axis=-1, keepdims=True)   # (tile_rows, 1)
        tt = jnp.sum(t * t, axis=-1, keepdims=True)
        st = jnp.sum(s * t, axis=-1, keepdims=True)
        # F.normalize(x, dim=-1): x / max(||x||, eps) -- keep the clamp per
        # factor so degenerate rows match the reference semantics exactly.
        inv_s = 1.0 / jnp.maximum(jnp.sqrt(ss), EPS)
        inv_t = 1.0 / jnp.maximum(jnp.sqrt(tt), EPS)
        cos = st * inv_s * inv_t                      # (tile_rows, 1)

        # Band mask and out-of-bounds tail mask (no padding copies in HBM).
        row_ids = lax.broadcasted_iota(jnp.int32, (tile_rows, 1), 0) + i * tile_rows
        in_bounds = row_ids < total_rows
        band = jnp.logical_and(cos <= alpha, cos >= beta)
        m = jnp.logical_and(band, in_bounds)

        # Per-row partial accumulation; defer the cross-sublane reduce.
        sum_acc[...] += jnp.where(m, 1.0 - cos, 0.0)
        cnt_acc[...] += m.astype(jnp.float32)

        @pl.when(i == pl.num_programs(0) - 1)
        def _():
            sum_ref[...] = jnp.sum(sum_acc[...], axis=(0, 1), keepdims=True)
            cnt_ref[...] = jnp.sum(cnt_acc[...], axis=(0, 1), keepdims=True)

    return kernel


@functools.partial(jax.jit, static_argnames=("max_tile_rows",))
def _pair_cos_stats(s_feat, t_feat, max_tile_rows=_MAX_TILE_ROWS):
    """Returns (masked_sum_of_(1-cos), masked_count) for one feature pair."""
    D = s_feat.shape[-1]
    # Keep the native dtype (e.g. bf16) -- the f32 cast happens in-kernel.
    s2 = s_feat.reshape(-1, D)
    t2 = t_feat.reshape(-1, D)
    R = s2.shape[0]
    itemsize = jnp.dtype(s2.dtype).itemsize

    # Largest multiple-of-8 row tile that keeps the double-buffered inputs
    # within budget; never bigger than the (8-aligned) row count.
    rows_budget = max(8, _INPUT_VMEM_BUDGET // (4 * D * itemsize))
    tile_rows = min((rows_budget // 8) * 8, max_tile_rows, ((R + 7) // 8) * 8)
    tile_rows = max(tile_rows, 8)

    grid = (pl.cdiv(R, tile_rows),)
    kernel = _make_cos_stats_kernel(ALPHA, BETA, tile_rows, R)

    sum_out, cnt_out = pl.pallas_call(
        kernel,
        out_shape=(jax.ShapeDtypeStruct((1, 1), jnp.float32),
                   jax.ShapeDtypeStruct((1, 1), jnp.float32)),
        grid_spec=pltpu.PrefetchScalarGridSpec(
            num_scalar_prefetch=0,
            grid=grid,
            in_specs=[pl.BlockSpec((tile_rows, D), lambda i: (i, 0)),
                      pl.BlockSpec((tile_rows, D), lambda i: (i, 0))],
            out_specs=(pl.BlockSpec((1, 1), lambda i: (0, 0)),
                       pl.BlockSpec((1, 1), lambda i: (0, 0))),
            scratch_shapes=[pltpu.VMEM((tile_rows, 1), jnp.float32),
                            pltpu.VMEM((tile_rows, 1), jnp.float32)]),
        compiler_params=pltpu.CompilerParams(
            dimension_semantics=("arbitrary",),
            vmem_limit_bytes=_VMEM_LIMIT_BYTES),
    )(s2, t2)
    return sum_out[0, 0], cnt_out[0, 0]


def feature_cos_loss(student_features, teacher_features,
                     max_tile_rows=_MAX_TILE_ROWS):
    """Pallas implementation of FeatureCosLoss.forward."""
    total_loss = jnp.float32(0.0)
    count = jnp.float32(0.0)
    for s_feat, t_feat in zip(student_features, teacher_features):
        if s_feat.shape != t_feat.shape:
            raise ValueError(f"Shape mismatch: {s_feat.shape} vs {t_feat.shape}")
        pair_sum, pair_cnt = _pair_cos_stats(s_feat, t_feat,
                                             max_tile_rows=max_tile_rows)
        valid = pair_cnt > 0
        pair_mean = jnp.where(valid, pair_sum / jnp.maximum(pair_cnt, 1.0), 0.0)
        total_loss = total_loss + pair_mean
        count = count + jnp.where(valid, 1.0, 0.0)
    return jnp.where(count > 0, total_loss / jnp.maximum(count, 1.0),
                     jnp.float32(0.0))


def _reference_loss(student_features, teacher_features):
    """Pure-JAX reference for correctness check."""
    total, count = 0.0, 0.0
    for s, t in zip(student_features, teacher_features):
        D = s.shape[-1]
        s2 = s.reshape(-1, D).astype(jnp.float32)
        t2 = t.reshape(-1, D).astype(jnp.float32)
        sn = s2 / jnp.maximum(jnp.linalg.norm(s2, axis=-1, keepdims=True), EPS)
        tn = t2 / jnp.maximum(jnp.linalg.norm(t2, axis=-1, keepdims=True), EPS)
        cos = jnp.sum(sn * tn, axis=-1)
        mask = (cos <= ALPHA) & (cos >= BETA)
        cnt = jnp.sum(mask.astype(jnp.float32))
        sm = jnp.sum(jnp.where(mask, 1.0 - cos, 0.0))
        valid = cnt > 0
        total = total + jnp.where(valid, sm / jnp.maximum(cnt, 1.0), 0.0)
        count = count + jnp.where(valid, 1.0, 0.0)
    return jnp.where(count > 0, total / jnp.maximum(count, 1.0), 0.0)


if __name__ == "__main__":
    key = jax.random.PRNGKey(0)
    ks = jax.random.split(key, 6)

    # Pair 1: f32, rows = 16.
    s1 = jax.random.normal(ks[0], (2, 8, 32), dtype=jnp.float32)
    t1 = s1 + 1.0 * jax.random.normal(ks[1], (2, 8, 32), dtype=jnp.float32)

    # Pair 2: f32, rows = 18 (not a multiple of 8) -> exercises tail masking.
    s2 = jax.random.normal(ks[2], (2, 9, 32), dtype=jnp.float32)
    t2 = s2 + 1.2 * jax.random.normal(ks[3], (2, 9, 32), dtype=jnp.float32)

    # Pair 3: bf16 -> exercises the native-dtype (halved HBM traffic) path.
    s3f = jax.random.normal(ks[4], (2, 16, 32), dtype=jnp.float32)
    t3f = s3f + 1.1 * jax.random.normal(ks[5], (2, 16, 32), dtype=jnp.float32)
    s3 = s3f.astype(jnp.bfloat16)
    t3 = t3f.astype(jnp.bfloat16)

    student_feats = [s1, s2, s3]
    teacher_feats = [t1, t2, t3]

    loss = jax.block_until_ready(feature_cos_loss(student_feats, teacher_feats))
    # Small tiles force a multi-step grid with a partial last tile.
    loss_small = jax.block_until_ready(
        feature_cos_loss(student_feats, teacher_feats, max_tile_rows=8))
    ref = jax.block_until_ready(_reference_loss(student_feats, teacher_feats))

    assert jnp.allclose(loss, ref, atol=1e-4, rtol=1e-4), (loss, ref)
    assert jnp.allclose(loss_small, ref, atol=1e-4, rtol=1e-4), (loss_small, ref)

    print("KERNEL_OK")
</pallas_src>

<mosaic_0001>
module attributes {stable_mosaic.version = 11 : i64} {
  func.func @kernel(%arg0: i32, %arg1: memref<16x32xf32, #tpu.memory_space<vmem>>, %arg2: memref<16x32xf32, #tpu.memory_space<vmem>>, %arg3: memref<1x1xf32, #tpu.memory_space<vmem>>, %arg4: memref<1x1xf32, #tpu.memory_space<vmem>>, %arg5: memref<16x1xf32, #tpu.memory_space<vmem>>, %arg6: memref<16x1xf32, #tpu.memory_space<vmem>>) attributes {dimension_semantics = [#tpu.dimension_semantics<arbitrary>], iteration_bounds = array<i64: 1>, scalar_prefetch = 0 : i64, scratch_operands = 2 : i64, tpu.core_type = #tpu.core_type<tc>, window_params = [{transform_indices = @transform_0, window_bounds = array<i64: 16, 32>}, {transform_indices = @transform_1, window_bounds = array<i64: 16, 32>}, {pipeline_mode = #tpu.pipeline_mode<synchronous>, transform_indices = @transform_2, window_bounds = array<i64: 1, 1>}, {pipeline_mode = #tpu.pipeline_mode<synchronous>, transform_indices = @transform_3, window_bounds = array<i64: 1, 1>}]} {
    %c0_i32 = arith.constant 0 : i32
    %0 = arith.cmpi eq, %arg0, %c0_i32 : i32
    %1 = arith.extui %0 : i1 to i32
    %c0_i32_0 = arith.constant 0 : i32
    %2 = arith.cmpi ne, %1, %c0_i32_0 : i32
    scf.if %2 {
      %cst_25 = arith.constant 0.000000e+00 : f32
      %53 = vector.broadcast %cst_25 : f32 to vector<16x1xf32>
      %c0_26 = arith.constant 0 : index
      %c0_27 = arith.constant 0 : index
      %54 = vector.load %arg5[%c0_26, %c0_27] : memref<16x1xf32, #tpu.memory_space<vmem>>, vector<16x1xf32>
      tpu.vector_store %arg5[%c0_26, %c0_27], %53 {strides = array<i32>} : memref<16x1xf32, #tpu.memory_space<vmem>>, vector<16x1xf32>,
      %cst_28 = arith.constant 0.000000e+00 : f32
      %55 = vector.broadcast %cst_28 : f32 to vector<16x1xf32>
      %c0_29 = arith.constant 0 : index
      %c0_30 = arith.constant 0 : index
      %56 = vector.load %arg6[%c0_29, %c0_30] : memref<16x1xf32, #tpu.memory_space<vmem>>, vector<16x1xf32>
      tpu.vector_store %arg6[%c0_29, %c0_30], %55 {strides = array<i32>} : memref<16x1xf32, #tpu.memory_space<vmem>>, vector<16x1xf32>,
    } else {
    }
    %c0 = arith.constant 0 : index
    %c0_1 = arith.constant 0 : index
    %3 = vector.load %arg1[%c0, %c0_1] : memref<16x32xf32, #tpu.memory_space<vmem>>, vector<16x32xf32>
    %c0_2 = arith.constant 0 : index
    %c0_3 = arith.constant 0 : index
    %4 = vector.load %arg2[%c0_2, %c0_3] : memref<16x32xf32, #tpu.memory_space<vmem>>, vector<16x32xf32>
    %5 = arith.mulf %3, %3 : vector<16x32xf32>
    %cst = arith.constant dense<0.000000e+00> : vector<16xf32>
    %6 = vector.multi_reduction <add>, %5, %cst [1] : vector<16x32xf32> to vector<16xf32>
    %7 = vector.shape_cast %6 : vector<16xf32> to vector<16x1xf32>
    %8 = arith.mulf %4, %4 : vector<16x32xf32>
    %cst_4 = arith.constant dense<0.000000e+00> : vector<16xf32>
    %9 = vector.multi_reduction <add>, %8, %cst_4 [1] : vector<16x32xf32> to vector<16xf32>
    %10 = vector.shape_cast %9 : vector<16xf32> to vector<16x1xf32>
    %11 = arith.mulf %3, %4 : vector<16x32xf32>
    %cst_5 = arith.constant dense<0.000000e+00> : vector<16xf32>
    %12 = vector.multi_reduction <add>, %11, %cst_5 [1] : vector<16x32xf32> to vector<16xf32>
    %13 = vector.shape_cast %12 : vector<16xf32> to vector<16x1xf32>
    %14 = math.sqrt %7 : vector<16x1xf32>
    %cst_6 = arith.constant 9.99999996E-13 : f32
    %15 = vector.broadcast %cst_6 : f32 to vector<16x1xf32>
    %16 = arith.maximumf %14, %15 : vector<16x1xf32>
    %cst_7 = arith.constant 1.000000e+00 : f32
    %17 = vector.broadcast %cst_7 : f32 to vector<16x1xf32>
    %18 = arith.divf %17, %16 : vector<16x1xf32>
    %19 = math.sqrt %10 : vector<16x1xf32>
    %cst_8 = arith.constant 9.99999996E-13 : f32
    %20 = vector.broadcast %cst_8 : f32 to vector<16x1xf32>
    %21 = arith.maximumf %19, %20 : vector<16x1xf32>
    %cst_9 = arith.constant 1.000000e+00 : f32
    %22 = vector.broadcast %cst_9 : f32 to vector<16x1xf32>
    %23 = arith.divf %22, %21 : vector<16x1xf32>
    %24 = arith.mulf %13, %18 : vector<16x1xf32>
    %25 = arith.mulf %24, %23 : vector<16x1xf32>
    %26 = tpu.iota {dimensions = array<i32: 0>} : vector<16x1xi32>
    %c16_i32 = arith.constant 16 : i32
    %27 = arith.muli %arg0, %c16_i32 : i32
    %28 = vector.broadcast %27 : i32 to vector<16x1xi32>
    %29 = arith.addi %26, %28 : vector<16x1xi32>
    %c16_i32_10 = arith.constant 16 : i32
    %30 = vector.broadcast %c16_i32_10 : i32 to vector<16x1xi32>
    %31 = arith.cmpi slt, %29, %30 : vector<16x1xi32>
    %cst_11 = arith.constant 8.500000e-01 : f32
    %32 = vector.broadcast %cst_11 : f32 to vector<16x1xf32>
    %33 = arith.cmpf ole, %25, %32 : vector<16x1xf32>
    %cst_12 = arith.constant 4.000000e-01 : f32
    %34 = vector.broadcast %cst_12 : f32 to vector<16x1xf32>
    %35 = arith.cmpf oge, %25, %34 : vector<16x1xf32>
    %36 = arith.andi %33, %35 : vector<16x1xi1>
    %37 = arith.andi %36, %31 : vector<16x1xi1>
    %c0_13 = arith.constant 0 : index
    %c0_14 = arith.constant 0 : index
    %38 = vector.load %arg5[%c0_13, %c0_14] : memref<16x1xf32, #tpu.memory_space<vmem>>, vector<16x1xf32>
    %cst_15 = arith.constant 1.000000e+00 : f32
    %39 = vector.broadcast %cst_15 : f32 to vector<16x1xf32>
    %40 = arith.subf %39, %25 : vector<16x1xf32>
    %cst_16 = arith.constant 0.000000e+00 : f32
    %41 = vector.broadcast %cst_16 : f32 to vector<16x1xf32>
    %42 = arith.select %37, %40, %41 : vector<16x1xi1>, vector<16x1xf32>
    %43 = arith.addf %38, %42 : vector<16x1xf32>
    %c0_17 = arith.constant 0 : index
    %c0_18 = arith.constant 0 : index
    %44 = vector.load %arg5[%c0_17, %c0_18] : memref<16x1xf32, #tpu.memory_space<vmem>>, vector<16x1xf32>
    tpu.vector_store %arg5[%c0_17, %c0_18], %43 {strides = array<i32>} : memref<16x1xf32, #tpu.memory_space<vmem>>, vector<16x1xf32>,
    %c0_19 = arith.constant 0 : index
    %c0_20 = arith.constant 0 : index
    %45 = vector.load %arg6[%c0_19, %c0_20] : memref<16x1xf32, #tpu.memory_space<vmem>>, vector<16x1xf32>
    %46 = arith.extui %37 : vector<16x1xi1> to vector<16x1xi32>
    %47 = arith.sitofp %46 : vector<16x1xi32> to vector<16x1xf32>
    %48 = arith.addf %45, %47 : vector<16x1xf32>
    %c0_21 = arith.constant 0 : index
    %c0_22 = arith.constant 0 : index
    %49 = vector.load %arg6[%c0_21, %c0_22] : memref<16x1xf32, #tpu.memory_space<vmem>>, vector<16x1xf32>
    tpu.vector_store %arg6[%c0_21, %c0_22], %48 {strides = array<i32>} : memref<16x1xf32, #tpu.memory_space<vmem>>, vector<16x1xf32>,
    %c0_i32_23 = arith.constant 0 : i32
    %50 = arith.cmpi eq, %arg0, %c0_i32_23 : i32
    %51 = arith.extui %50 : i1 to i32
    %c0_i32_24 = arith.constant 0 : i32
    %52 = arith.cmpi ne, %51, %c0_i32_24 : i32
    scf.if %52 {
      %c0_25 = arith.constant 0 : index
      %c0_26 = arith.constant 0 : index
      %53 = vector.load %arg5[%c0_25, %c0_26] : memref<16x1xf32, #tpu.memory_space<vmem>>, vector<16x1xf32>
      %54 = vector.shape_cast %53 : vector<16x1xf32> to vector<1x16x1xf32>
      %cst_27 = arith.constant dense<0.000000e+00> : vector<1xf32>
      %55 = vector.multi_reduction <add>, %54, %cst_27 [1, 2] : vector<1x16x1xf32> to vector<1xf32>
      %56 = vector.shape_cast %55 : vector<1xf32> to vector<1x1x1xf32>
      %57 = vector.extract %56[0, 0, 0] : f32 from vector<1x1x1xf32>
      %58 = vector.broadcast %57 : f32 to vector<1x1xf32>
      %c0_28 = arith.constant 0 : index
      %c0_29 = arith.constant 0 : index
      %59 = vector.load %arg3[%c0_28, %c0_29] : memref<1x1xf32, #tpu.memory_space<vmem>>, vector<1x1xf32>
      tpu.vector_store %arg3[%c0_28, %c0_29], %58 {strides = array<i32>} : memref<1x1xf32, #tpu.memory_space<vmem>>, vector<1x1xf32>,
      %c0_30 = arith.constant 0 : index
      %c0_31 = arith.constant 0 : index
      %60 = vector.load %arg6[%c0_30, %c0_31] : memref<16x1xf32, #tpu.memory_space<vmem>>, vector<16x1xf32>
      %61 = vector.shape_cast %60 : vector<16x1xf32> to vector<1x16x1xf32>
      %cst_32 = arith.constant dense<0.000000e+00> : vector<1xf32>
      %62 = vector.multi_reduction <add>, %61, %cst_32 [1, 2] : vector<1x16x1xf32> to vector<1xf32>
      %63 = vector.shape_cast %62 : vector<1xf32> to vector<1x1x1xf32>
      %64 = vector.extract %63[0, 0, 0] : f32 from vector<1x1x1xf32>
      %65 = vector.broadcast %64 : f32 to vector<1x1xf32>
      %c0_33 = arith.constant 0 : index
      %c0_34 = arith.constant 0 : index
      %66 = vector.load %arg4[%c0_33, %c0_34] : memref<1x1xf32, #tpu.memory_space<vmem>>, vector<1x1xf32>
      tpu.vector_store %arg4[%c0_33, %c0_34], %65 {strides = array<i32>} : memref<1x1xf32, #tpu.memory_space<vmem>>, vector<1x1xf32>,
    } else {
    }
    return
  }
  func.func @transform_0(%arg0: i32) -> (i32, i32) {
    %c0_i32 = arith.constant 0 : i32
    %c0_i32_0 = arith.constant 0 : i32
    return %arg0, %c0_i32 : i32, i32
  }
  func.func @transform_1(%arg0: i32) -> (i32, i32) {
    %c0_i32 = arith.constant 0 : i32
    %c0_i32_0 = arith.constant 0 : i32
    return %arg0, %c0_i32 : i32, i32
  }
  func.func @transform_2(%arg0: i32) -> (i32, i32) {
    %c0_i32 = arith.constant 0 : i32
    %c0_i32_0 = arith.constant 0 : i32
    %c0_i32_1 = arith.constant 0 : i32
    return %c0_i32, %c0_i32_0 : i32, i32
  }
  func.func @transform_3(%arg0: i32) -> (i32, i32) {
    %c0_i32 = arith.constant 0 : i32
    %c0_i32_0 = arith.constant 0 : i32
    %c0_i32_1 = arith.constant 0 : i32
    return %c0_i32, %c0_i32_0 : i32, i32
  }
}

</mosaic_0001>

<bundles_post_ra>
// kernel: _pair_cos_stats.1
= control target key start
LH: loop header
LB: loop body
LE: loop exit
PB: predicated region body
PF: predicated region fallthrough
CT: control target
= control target key end

     0   :  { %9 = vsyncpa [#allocation5], 0  ;;  %s411_s0 = inlined_call_operand.hbm [shape: f32[16,32], index: 0, kind: input, shape index: {}]   ;;  %s412_s1 = inlined_call_operand.hbm [shape: f32[16,32], index: 1, kind: input, shape index: {}]   ;;  %s413_s2 = inlined_call_operand.hbm [shape: f32[1,1], index: 2, kind: output, shape index: {0}]   ;;  %s414_s3 = inlined_call_operand.hbm [shape: f32[1,1], index: 3, kind: output, shape index: {1}]  }
   0x1   :  { %10 = vsyncpa [#allocation8], 0 }
   0x2   :  { %11 = vsyncpa [#allocation6], 0 }
   0x3   :  { %12 = vsyncpa [#allocation11], 0  ;;  %s346_s12 = smov [#allocation4]  }
   0x4   :  { %s18_s13 = sshll.u32 %s346_s12, 4  ;;  %s19_s13 = int_to_ptr.vmem [resolvable:$true] %s18_s13 }
   0x5   :  { %s266_s14 = scalar_lea.vmem %s19_s13, 256  ;;  %p271_p1 = scmp.lt.s32.totalorder %s19_s13, %s19_s13 }
   0x6   :  { %p267_p0 = scmp.ne.s32.totalorder %s19_s13, %s266_s14  ;;  %p272_p2 = scmp.lt.s32.totalorder %s266_s14, %s266_s14 }
   0x8   :  { %p273_p3 = por %p272_p2, %p271_p1 }
   0xa   :  { %p274_p4 = pnand %p273_p3, %p267_p0 }
   0xc   :  { %277 = shalt.err (!%p274_p4)
}
   0xd   :  { %s347_s15 = smov 128   ;;  %s348_s16 = smov 8  }
   0xe   :  { %24 = dma.hbm_to_vmem [thread:$0]  %s411_s0, 256, %s19_s13, [#allocation5], %s347_s15, %s347_s15, %s348_s16  }
   0xf   :  { %s349_s19 = smov [#allocation7]  }
  0x10   :  { %s30_s20 = sshll.u32 %s349_s19, 4  ;;  %s31_s20 = int_to_ptr.vmem [resolvable:$true] %s30_s20 }
  0x11   :  { %s286_s21 = scalar_lea.vmem %s31_s20, 256  ;;  %p291_p6 = scmp.lt.s32.totalorder %s31_s20, %s31_s20 }
  0x12   :  { %p287_p5 = scmp.ne.s32.totalorder %s31_s20, %s286_s21  ;;  %p292_p7 = scmp.lt.s32.totalorder %s286_s21, %s286_s21 }
  0x14   :  { %p293_p8 = por %p292_p7, %p291_p6 }
  0x16   :  { %p294_p9 = pnand %p293_p8, %p287_p5 }
  0x18   :  { %297 = shalt.err (!%p294_p9)
}
  0x19   :  { %36 = dma.hbm_to_vmem [thread:$0]  %s412_s1, 256, %s31_s20, [#allocation8], %s347_s15, %s347_s15, %s348_s16  }
  0x1a   :  { %338 = dma.done.wait [#allocation5], 256  }
  0x1b   :  { %339 = vsyncadd [#allocation5], 4294967040 }
  0x1c   :  { %340 = dma.done.wait [#allocation8], 256  }
  0x1d   :  { %341 = vsyncadd [#allocation8], 4294967040  ;;  %v54_v0 = vld [vmem:[#allocation7] sm:$0xff]  ;;  %vm58_vm0 = vcmask 261120   ;;  %v52_v1 = vld [vmem:[#allocation4] sm:$0xff]  ;;  %vm47_vm1 = vcmask 7168  }
  0x1e   :  { %v55_v2 = vld [vmem:[#allocation7 + $0x8] sm:$0xff]  ;;  %v65_v3 = vmul.f32 %v54_v0, %v54_v0  ;;  %v56_v4 = vmul.f32 %v52_v1, %v52_v1  ;;  %v53_v6 = vld [vmem:[#allocation4 + $0x8] sm:$0xff]  ;;  %v73_v12 = vmul.f32 %v54_v0, %v52_v1  ;;  %v350_v16 = vmov 0.0   ;;  %s351_s0 = smov [#allocation9]   ;;  %s352_s24 = smov [#allocation10]  }
  0x1f   :  { %v66_v5 = vmul.f32 %v55_v2, %v55_v2  ;;  %v57_v7 = vmul.f32 %v53_v6, %v53_v6  ;;  %v74_v13 = vmul.f32 %v55_v2, %v53_v6  ;;  %48 = vst.msk [vmem:[#allocation2] sm:$0xff] %vm47_vm1, %v350_v16  ;;  %50 = vst.msk [vmem:[#allocation3] sm:$0xff] %vm47_vm1, %v350_v16  ;;  %s205_s1 = sshll.u32 %s351_s0, 4  ;;  %s215_s25 = sshll.u32 %s352_s24, 4  ;;  %s206_s1 = int_to_ptr.vmem [resolvable:$true] %s205_s1  ;;  %s216_s25 = int_to_ptr.vmem [resolvable:$true] %s215_s25 }
  0x20   :  { %v67_v8 = vsel %vm58_vm0, %v65_v3, 0.0  ;;  %v59_v9 = vsel %vm58_vm0, %v56_v4, 0.0  ;;  %v75_v14 = vsel %vm58_vm0, %v73_v12, 0.0  ;;  %49 = vst.msk [vmem:[#allocation2 + $0x8] sm:$0xff] %vm47_vm1, %v350_v16  ;;  %51 = vst.msk [vmem:[#allocation3 + $0x8] sm:$0xff] %vm47_vm1, %v350_v16  ;;  %s298_s28 = scalar_lea.vmem %s206_s1, 16  ;;  %p303_p11 = scmp.lt.s32.totalorder %s206_s1, %s206_s1 }
  0x21   :  { %68 = vadd.xlane.f32.xlu1 %v67_v8  ;;  %60 = vadd.xlane.f32.xlu0 %v59_v9  ;;  %v70_v10 = vsel %vm58_vm0, %v66_v5, 0.0  ;;  %v62_v11 = vsel %vm58_vm0, %v57_v7, 0.0  ;;  %v78_v15 = vsel %vm58_vm0, %v74_v13, 0.0  ;;  %vm181_vm0 = vcmask 0   ;;  %p299_p10 = scmp.ne.s32.totalorder %s206_s1, %s298_s28  ;;  %s302_s29 = scalar_lea.vmem %s206_s1, 32 }
  0x22   :  { %p304_p12 = scmp.lt.s32.totalorder %s302_s29, %s298_s28 }
  0x24   :  { %p305_p13 = por %p304_p12, %p303_p11 }
  0x25   :  { %71 = vadd.xlane.f32.xlu1 %v70_v10  ;;  %63 = vadd.xlane.f32.xlu0 %v62_v11 }
  0x26   :  { %v142_v52 = vld [vmem:[#allocation2] sm:$0xff]  ;;  %v153_v54 = vld [vmem:[#allocation3] sm:$0xff]  ;;  %p306_p0 = pnand %p305_p13, %p299_p10 }
  0x27   :  { %v143_v62 = vld [vmem:[#allocation2 + $0x8] sm:$0xff]  ;;  %v154_v0 = vld [vmem:[#allocation3 + $0x8] sm:$0xff] }
  0x29   :  { %76 = vadd.xlane.f32.xlu0 %v75_v14  ;;  %79 = vadd.xlane.f32.xlu1 %v78_v15 }
  0xaa   :  { %v69_v17 = vpop.xlane.xlu1 %68  ;;  %v61_v18 = vpop.xlane.xlu0 %60 }
  0xab   :  { %242 = vrsqrt.f32 %v69_v17  ;;  %vm103_vm2 = vcmp.eq.f32.partialorder %v69_v17, inf  ;;  %v106_v24 = vand.u32 2147483648, %v69_v17  ;;  %vm105_vm3 = vcmp.eq.f32.partialorder %v69_v17, 0.0 }
  0xac   :  { %244 = vrsqrt.f32 %v61_v18  ;;  %vm83_vm4 = vcmp.eq.f32.partialorder %v61_v18, inf  ;;  %v86_v27 = vand.u32 2147483648, %v61_v18  ;;  %vm85_vm5 = vcmp.eq.f32.partialorder %v61_v18, 0.0 }
  0xae   :  { %v72_v19 = vpop.xlane.xlu1 %71  ;;  %v64_v20 = vpop.xlane.xlu0 %63 }
  0xaf   :  { %246 = vrsqrt.f32 %v72_v19  ;;  %vm110_vm6 = vcmp.eq.f32.partialorder %v72_v19, inf  ;;  %v113_v36 = vand.u32 2147483648, %v72_v19  ;;  %vm112_vm7 = vcmp.eq.f32.partialorder %v72_v19, 0.0 }
  0xb0   :  { %248 = vrsqrt.f32 %v64_v20  ;;  %vm90_vm8 = vcmp.eq.f32.partialorder %v64_v20, inf  ;;  %v93_v39 = vand.u32 2147483648, %v64_v20  ;;  %vm92_vm9 = vcmp.eq.f32.partialorder %v64_v20, 0.0 }
  0xb2   :  { %v77_v45 = vpop.xlane.xlu0 %76  ;;  %v80_v49 = vpop.xlane.xlu1 %79 }
  0xb8   :  { %v243_v21 = vpop.eup %242 }
  0xb9   :  { %v245_v22 = vpop.eup %244  ;;  %v102_v23 = vmul.f32 %v243_v21, %v69_v17 }
  0xba   :  { %v82_v25 = vmul.f32 %v245_v22, %v61_v18 }
  0xbb   :  { %v104_v26 = vsel %vm103_vm2, %v69_v17, %v102_v23 }
  0xbc   :  { %v247_v28 = vpop.eup %246  ;;  %v107_v29 = vsel %vm105_vm3, %v106_v24, %v104_v26  ;;  %v84_v30 = vsel %vm83_vm4, %v61_v18, %v82_v25 }
  0xbd   :  { %v249_v31 = vpop.eup %248  ;;  %v87_v32 = vsel %vm85_vm5, %v86_v27, %v84_v30  ;;  %v109_v33 = vmul.f32 %v247_v28, %v72_v19  ;;  %v115_v34 = vmax.f32 %v107_v29, 1e-12 }
  0xbe   :  { %v95_v35 = vmax.f32 %v87_v32, 1e-12  ;;  %v89_v37 = vmul.f32 %v249_v31, %v64_v20 }
  0xbf   :  { %v111_v38 = vsel %vm110_vm6, %v72_v19, %v109_v33 }
  0xc0   :  { %v114_v40 = vsel %vm112_vm7, %v113_v36, %v111_v38  ;;  %v91_v41 = vsel %vm90_vm8, %v64_v20, %v89_v37  ;;  %250 = vrcp.f32 %v95_v35 }
  0xc1   :  { %v94_v42 = vsel %vm92_vm9, %v93_v39, %v91_v41  ;;  %252 = vrcp.f32 %v115_v34  ;;  %v116_v43 = vmax.f32 %v114_v40, 1e-12 }
  0xc2   :  { %v96_v44 = vmax.f32 %v94_v42, 1e-12 }
  0xc4   :  { %254 = vrcp.f32 %v96_v44 }
  0xc5   :  { %256 = vrcp.f32 %v116_v43 }
  0xcd   :  { %v251_v46 = vpop.eup %250 }
  0xce   :  { %v121_v47 = vmul.f32 %v251_v46, %v77_v45  ;;  %v253_v48 = vpop.eup %252 }
  0xd0   :  { %v123_v50 = vmul.f32 %v253_v48, %v121_v47 }
  0xd1   :  { %v255_v51 = vpop.eup %254 }
  0xd2   :  { %vm134_vm10 = vcmp.le.f32.partialorder %v123_v50, 0.85  ;;  %vm136_vm11 = vcmp.ge.f32.partialorder %v123_v50, 0.4  ;;  %v144_v53 = vsub.f32 1.0, %v123_v50  ;;  %v122_v55 = vmul.f32 %v255_v51, %v80_v49  ;;  %v257_v56 = vpop.eup %256 }
  0xd3   :  { %vm138_vm12 = vmand %vm134_vm10, %vm136_vm11 }
  0xd4   :  { %v146_v57 = vsel %vm138_vm12, %v144_v53, 0.0  ;;  %v229_v58 = vsel %vm138_vm12, 1.0, %v350_v16  ;;  %v124_v59 = vmul.f32 %v257_v56, %v122_v55 }
  0xd5   :  { %v148_v60 = vadd.f32 %v146_v57, %v142_v52  ;;  %v159_v61 = vadd.f32 %v229_v58, %v153_v54 }
  0xd6   :  { %vm135_vm13 = vcmp.le.f32.partialorder %v124_v59, 0.85  ;;  %vm137_vm14 = vcmp.ge.f32.partialorder %v124_v59, 0.4  ;;  %v145_v63 = vsub.f32 1.0, %v124_v59 }
  0xd7   :  { %151 = vst.msk [vmem:[#allocation2] sm:$0xff] %vm47_vm1, %v148_v60  ;;  %161 = vst.msk [vmem:[#allocation3] sm:$0xff] %vm47_vm1, %v159_v61 }
  0xd8   :  { %vm139_vm15 = vmand %vm135_vm13, %vm137_vm14 }
  0xd9   :  { %v147_v1 = vsel %vm139_vm15, %v145_v63, 0.0  ;;  %v230_v2 = vsel %vm139_vm15, 1.0, %v350_v16 }
  0xda   :  { %v149_v3 = vadd.f32 %v147_v1, %v143_v62  ;;  %v160_v4 = vadd.f32 %v230_v2, %v154_v0 }
  0xdc   :  { %152 = vst.msk [vmem:[#allocation2 + $0x8] sm:$0xff] %vm47_vm1, %v149_v3  ;;  %162 = vst.msk [vmem:[#allocation3 + $0x8] sm:$0xff] %vm47_vm1, %v160_v4 }
  0xde   :  { %v183_v5 = vld [vmem:[#allocation3] sm:$0xff]  ;;  %v166_v6 = vld [vmem:[#allocation2] sm:$0xff] }
  0xdf   :  { %v185_v9 = vsel %vm47_vm1, %v183_v5, 0.0  ;;  %v168_v11 = vsel %vm47_vm1, %v166_v6, 0.0 }
  0xe3   :  { %v184_v7 = vld [vmem:[#allocation3 + $0x8] sm:$0xff]  ;;  %v167_v8 = vld [vmem:[#allocation2 + $0x8] sm:$0xff] }
  0xe4   :  { %v186_v10 = vsel %vm47_vm1, %v184_v7, 0.0  ;;  %v169_v12 = vsel %vm47_vm1, %v167_v8, 0.0 }
  0xe5   :  { %v187_v13 = vadd.f32 %v186_v10, %v185_v9  ;;  %v170_v14 = vadd.f32 %v169_v12, %v168_v11 }
  0xe7   :  { %188 = vadd.xlane.f32.xlu1 %v187_v13  ;;  %171 = vadd.xlane.f32.xlu0 %v170_v14 }
 0x170   :  { %v189_v15 = vpop.xlane.xlu1 %188  ;;  %v172_v16 = vpop.xlane.xlu0 %171 }
 0x171   :  { %v190_v17 = vrot.slane %v189_v15, 4  ;;  %v173_v18 = vrot.slane %v172_v16, 4 }
 0x173   :  { %v191_v19 = vadd.f32 %v190_v17, %v189_v15  ;;  %v174_v20 = vadd.f32 %v173_v18, %v172_v16 }
 0x175   :  { %v192_v21 = vrot.slane %v191_v19, 2  ;;  %v175_v22 = vrot.slane %v174_v20, 2 }
 0x177   :  { %v193_v23 = vadd.f32 %v192_v21, %v191_v19  ;;  %v176_v24 = vadd.f32 %v175_v22, %v174_v20 }
 0x179   :  { %v177_v25 = vrot.slane %v176_v24, 1  ;;  %v194_v26 = vrot.slane %v193_v23, 1 }
 0x17b   :  { %v178_v27 = vadd.f32 %v177_v25, %v176_v24  ;;  %v195_v28 = vadd.f32 %v194_v26, %v193_v23 }
 0x17d   :  { %231 = vpush %v178_v27 }
 0x17e   :  { %233 = vpush %v195_v28 }
 0x1ae   :  { %s232_s26 = spop %231 }
 0x1af   :  { %v180_v29 = vstv %s232_s26  ;;  %s234_s27 = spop %233 }
 0x1b0   :  { %v197_v30 = vstv %s234_s27  ;;  %182 = vst.msk [vmem:[#allocation9] sm:$0x1] %vm181_vm0, %v180_v29 }
 0x1b1   :  { %309 = shalt.err (!%p306_p0)
}
 0x1b2   :  { %208 = dma.vmem_to_hbm [thread:$0]  %s206_s1, 16, %s413_s2, [#allocation6]   ;;  %198 = vst.msk [vmem:[#allocation10] sm:$0x1] %vm181_vm0, %v197_v30 }
 0x1b3   :  { %s318_s5 = scalar_lea.vmem %s216_s25, 16  ;;  %s322_s6 = scalar_lea.vmem %s216_s25, 32 }
 0x1b4   :  { %p319_p1 = scmp.ne.s32.totalorder %s216_s25, %s318_s5  ;;  %p323_p2 = scmp.lt.s32.totalorder %s216_s25, %s216_s25 }
 0x1b5   :  { %p324_p3 = scmp.lt.s32.totalorder %s322_s6, %s318_s5 }
 0x1b7   :  { %p325_p4 = por %p324_p3, %p323_p2 }
 0x1b9   :  { %p326_p5 = pnand %p325_p4, %p319_p1 }
 0x1bb   :  { %329 = shalt.err (!%p326_p5)
}
 0x1bc   :  { %218 = dma.vmem_to_hbm [thread:$0]  %s216_s25, 16, %s414_s3, [#allocation11]  }
 0x1bd   :  { %342 = dma.done.wait [#allocation6], 16  }
 0x1be   :  { %343 = vsyncadd [#allocation6], 4294967280 }
 0x1bf   :  { %344 = dma.done.wait [#allocation11], 16  }
 0x1c0   :  { %345 = vsyncadd [#allocation11], 4294967280 }
 0x1c1   :  { %225 = vsyncpa [#allocation5], 1 }
 0x1c2   :  { %226 = vsyncpa [#allocation8], 1 }
 0x1c3   :  { %227 = vsyncpa [#allocation6], 1 }
 0x1c4   :  { %228 = vsyncpa [#allocation11], 1 }

</bundles_post_ra>
